<compile_context>
chip_gen: v5e
topology: v5e:2x2
jax: 0.10.0
libtpu: 0.0.40
codegen_flags: <defaults>
</compile_context>

<pallas_src>
import functools

import jax
import jax.numpy as jnp
from jax.experimental import pallas as pl
from jax.experimental.pallas import tpu as pltpu

_MiB = 1024 * 1024


# --------------------------------------------------------------------------
# Kernel
# --------------------------------------------------------------------------
def _minmax_rows_kernel(x_ref, min_ref, max_ref, mn_sc, mx_sc, *,
                        td, true_d, nc_total, nc_inner, has_oob, acc_dtype):
    """Per-row min/max of a (TR, D) stripe, streamed in (TR, td) column tiles.

    Scratch mn_sc / mx_sc are (TR, 128) lane-wise accumulators (pure VPU work
    in the steady state); the cross-lane XLU reduce happens only on the last
    column step of each (row tile, column group).
    """
    p = pl.program_id(1)          # parallel column group
    j = pl.program_id(2)          # column step inside the group (reduction)
    gb = p * nc_inner + j         # global column-block index (unclamped)

    @pl.when(j == 0)
    def _():
        mn_sc[...] = jnp.full_like(mn_sc, jnp.inf)
        mx_sc[...] = jnp.full_like(mx_sc, -jnp.inf)

    def accum(ncols):
        # Fold columns [0, ncols) of this tile into the (TR, 128) scratch.
        full = ncols // 128
        for c in range(full):                      # static, unrolled at trace
            blk = x_ref[:, c * 128:(c + 1) * 128].astype(acc_dtype)
            mn_sc[...] = jnp.minimum(mn_sc[...], blk)
            mx_sc[...] = jnp.maximum(mx_sc[...], blk)
        rem = ncols % 128
        if rem:                                    # cold: at most once per tile
            blk = x_ref[:, full * 128:full * 128 + rem].astype(acc_dtype)
            mn_sc[:, :rem] = jnp.minimum(mn_sc[:, :rem], blk)
            mx_sc[:, :rem] = jnp.maximum(mx_sc[:, :rem], blk)

    partial_last = (true_d % td) != 0
    valid_last = true_d - (nc_total - 1) * td      # valid cols in last block

    if partial_last:
        # Steady state: full, unmasked tiles.  Only the globally-last column
        # block uses a narrower (static) slice, so padding columns are never
        # read into the reduction.
        @pl.when(gb < nc_total - 1)
        def _():
            accum(td)

        @pl.when(gb == nc_total - 1)
        def _():
            accum(valid_last)
    elif has_oob:
        # Clamped (out-of-range) blocks of the last parallel group are skipped.
        @pl.when(gb < nc_total)
        def _():
            accum(td)
    else:
        accum(td)

    @pl.when(j == nc_inner - 1)
    def _():
        # Single cross-lane (XLU) reduce per (row tile, column group).
        min_ref[...] = jnp.min(mn_sc[...], axis=1, keepdims=True).astype(min_ref.dtype)
        max_ref[...] = jnp.max(mx_sc[...], axis=1, keepdims=True).astype(max_ref.dtype)


# --------------------------------------------------------------------------
# Tiling / generation-aware sizing
# --------------------------------------------------------------------------
def _chip_budget():
    """(block_bytes, vmem_limit_bytes) tuned per TPU generation."""
    block, limit = 4 * _MiB, 32 * _MiB          # safe fallback
    try:
        info = pltpu.get_tpu_info()
        vmem = int(getattr(info, "vmem_capacity_bytes", 0))
        name = str(getattr(info, "chip_version", "")).lower()
        if "v5" in name:
            block, limit = 4 * _MiB, 32 * _MiB  # v5e: modest tiles
        elif 0 < vmem <= 64 * _MiB:
            # v7x-class: ~3.2 TB/s HBM, 64 MiB VMEM -> big blocks amortize the
            # ~0.35us per-grid-step overhead; 2x8 MiB double-buffered fits.
            block, limit = 8 * _MiB, 40 * _MiB
        else:
            # v6e (128 MiB VMEM): 6 MiB blocks, 12 MiB double-buffered.
            block, limit = 6 * _MiB, 48 * _MiB
    except Exception:
        pass                                    # interpret mode / unknown HW
    return block, limit


def _round_down(v, m):
    return (v // m) * m


def _pick_tiles(n, d, itemsize, block_bytes):
    """Row tile TR (multiple of the sublane packing or == n) and column tile TD
    (multiple of 128 or == d), sized to ~block_bytes per input block."""
    packing = max(8, 8 * (4 // max(1, itemsize)))   # 8 f32 / 16 bf16 / 32 int8
    if n <= packing:
        tr = n
    else:
        tr = _round_down(min(n, 256), packing)
    pad_rows = -(-max(tr, 1) // packing) * packing  # VMEM rows are padded
    max_cols = max(128, block_bytes // max(1, pad_rows * itemsize))
    if d <= max_cols:
        td = d
        # Whole row fits in one column tile: grow TR toward the budget so
        # there are fewer grid steps (less fixed per-step overhead).
        if n > tr:
            d_pad = -(-d // 128) * 128
            tr_budget = block_bytes // max(1, d_pad * itemsize)
            tr_new = _round_down(min(n, 1024, tr_budget), packing)
            tr = max(tr, tr_new)
    else:
        td = _round_down(max_cols, 128)
    return tr, td


# --------------------------------------------------------------------------
# Wrapper: row-wise min/max of a 2-D array
# --------------------------------------------------------------------------
def rowwise_minmax(x2d):
    """x2d: (N, D) floating dtype. Returns (min, max), each (N, 1) in x2d.dtype."""
    n, d = x2d.shape
    dt = jnp.dtype(x2d.dtype)
    assert jnp.issubdtype(dt, jnp.floating), "ObserverBase expects float input"
    # min/max are exact selections -> accumulate in the input dtype when the
    # VPU supports it (halves vreg/VMEM/DMA pressure on bf16-capable chips).
    if dt in (jnp.dtype(jnp.float32), jnp.dtype(jnp.bfloat16), jnp.dtype(jnp.float16)):
        acc_dtype = dt
    else:
        acc_dtype = jnp.dtype(jnp.float32)
    itemsize = dt.itemsize

    block_bytes, vmem_limit = _chip_budget()
    tr, td = _pick_tiles(n, d, itemsize, block_bytes)

    nr = pl.cdiv(n, tr)
    nc_total = pl.cdiv(d, td)
    # If rows give no parallelism but there are many column tiles, split the
    # reduction into 2 parallel column groups so both v7x TensorCores get work.
    P = 2 if (nr == 1 and nc_total >= 4) else 1
    nc_inner = pl.cdiv(nc_total, P)
    has_oob = (nc_inner * P) != nc_total

    if has_oob:
        def in_idx(i, p, j):
            return (i, jnp.minimum(p * nc_inner + j, nc_total - 1))
    else:
        def in_idx(i, p, j):
            return (i, p * nc_inner + j)

    kernel = functools.partial(
        _minmax_rows_kernel, td=td, true_d=d, nc_total=nc_total,
        nc_inner=nc_inner, has_oob=has_oob, acc_dtype=acc_dtype)

    # NOTE: the last ROW tile is unmasked when n % tr != 0.  The garbage rows
    # it reduces are discarded by the partial output-block writeback, which is
    # safe for min/max selections but would NOT be safe for e.g. a mean.
    mn, mx = pl.pallas_call(
        kernel,
        out_shape=(
            jax.ShapeDtypeStruct((P, n, 1), dt),
            jax.ShapeDtypeStruct((P, n, 1), dt),
        ),
        grid_spec=pltpu.PrefetchScalarGridSpec(
            num_scalar_prefetch=0,
            grid=(nr, P, nc_inner),
            in_specs=[pl.BlockSpec((tr, td), in_idx)],
            out_specs=[
                pl.BlockSpec((None, tr, 1), lambda i, p, j: (p, i, 0)),
                pl.BlockSpec((None, tr, 1), lambda i, p, j: (p, i, 0)),
            ],
            scratch_shapes=[
                pltpu.VMEM((tr, 128), acc_dtype),
                pltpu.VMEM((tr, 128), acc_dtype),
            ],
        ),
        compiler_params=pltpu.CompilerParams(
            dimension_semantics=("parallel", "parallel", "arbitrary"),
            vmem_limit_bytes=vmem_limit),
        cost_estimate=pl.CostEstimate(
            flops=2 * n * d,
            transcendentals=0,
            bytes_accessed=n * d * itemsize + 2 * P * n * itemsize),
    )(x2d)

    # Fold the (tiny) parallel column-group partials; exact for min/max.
    mn = jnp.min(mn, axis=0)
    mx = jnp.max(mx, axis=0)
    return mn, mx


def _layer_view(x):
    """2-D (R, C) view of x with R*C == numel, preferring R>=8 and C>=128."""
    numel = int(x.size)
    cands = {1}
    r = 1
    while r < 1024 and numel % (r * 2) == 0:       # power-of-two divisors
        r *= 2
        cands.add(r)
    p = 1
    for dd in x.shape[:-1]:                        # prefix products (exact)
        p *= int(dd)
        cands.add(p)
    def score(rr):
        cc = numel // rr
        return (int(rr >= 8) + int(cc >= 128), min(rr, 1024), cc)
    best = max(cands, key=score)
    # TODO(synk): a 1-D prime-length input still degrades to a (1, numel) view
    # (correct but lane/sublane sparse); a padded flat-index mask path would fix it.
    return jnp.reshape(x, (best, numel // best))


# --------------------------------------------------------------------------
# Module ports
# --------------------------------------------------------------------------
class ObserverBase:
    """JAX/Pallas port of the PyTorch ObserverBase."""

    def __init__(self, q_level):
        self.q_level = q_level

    def update_range(self, min_val, max_val):
        # Abstract in the reference module as well.
        raise NotImplementedError

    def __call__(self, x):
        if self.q_level == 'Layer':
            flat = _layer_view(x)
            mn, mx = rowwise_minmax(flat)
            min_val = jnp.min(mn)                   # 0-dim, like torch.min(input)
            max_val = jnp.max(mx)
        elif self.q_level == 'Channel':
            flat = jnp.reshape(x, (x.shape[0], -1))  # flatten(start_dim=1)
            mn, mx = rowwise_minmax(flat)
            min_val = mn[:, 0]                       # (N,), like torch.min(x, 1)[0]
            max_val = mx[:, 0]
        elif self.q_level == 'FC':
            mn, mx = rowwise_minmax(x)
            min_val = mn                             # (N, 1), keepdim=True
            max_val = mx
        else:
            raise ValueError(f"unknown q_level: {self.q_level}")
        self.update_range(min_val, max_val)
        return min_val, max_val


class MinMaxObserver(ObserverBase):
    """Minimal concrete subclass so the (abstract) forward can be exercised."""

    def update_range(self, min_val, max_val):
        self.min_val = min_val
        self.max_val = max_val


# --------------------------------------------------------------------------
# Self-test
# --------------------------------------------------------------------------
if __name__ == "__main__":
    key = jax.random.PRNGKey(0)
    k1, k2 = jax.random.split(key)

    # Conv-style activation/weight tensor, NCHW.
    x_conv = jax.random.normal(k1, (2, 4, 16, 16), dtype=jnp.float32)
    # FC-style activation.
    x_fc = jax.random.normal(k2, (8, 32), dtype=jnp.float32)

    ok = True

    # q_level == 'Layer'
    obs_layer = MinMaxObserver('Layer')
    mn, mx = obs_layer(x_conv)
    jax.block_until_ready((mn, mx))
    ok &= bool(jnp.allclose(mn, jnp.min(x_conv)))
    ok &= bool(jnp.allclose(mx, jnp.max(x_conv)))
    ok &= (mn.shape == () and mx.shape == ())

    # q_level == 'Channel'
    obs_ch = MinMaxObserver('Channel')
    mn, mx = obs_ch(x_conv)
    jax.block_until_ready((mn, mx))
    flat = x_conv.reshape(x_conv.shape[0], -1)
    ok &= bool(jnp.allclose(mn, jnp.min(flat, axis=1)))
    ok &= bool(jnp.allclose(mx, jnp.max(flat, axis=1)))
    ok &= (mn.shape == (2,) and mx.shape == (2,))

    # q_level == 'FC'
    obs_fc = MinMaxObserver('FC')
    mn, mx = obs_fc(x_fc)
    jax.block_until_ready((mn, mx))
    ok &= bool(jnp.allclose(mn, jnp.min(x_fc, axis=1, keepdims=True)))
    ok &= bool(jnp.allclose(mx, jnp.max(x_fc, axis=1, keepdims=True)))
    ok &= (mn.shape == (8, 1) and mx.shape == (8, 1))

    if ok:
        print("KERNEL_OK")
    else:
        raise SystemExit("mismatch vs reference")
</pallas_src>

<mosaic_0001>
module attributes {stable_mosaic.version = 11 : i64} {
  func.func @_minmax_rows_kernel(%arg0: i32, %arg1: i32, %arg2: i32, %arg3: memref<16x128xf32, #tpu.memory_space<vmem>>, %arg4: memref<1x16x1xf32, #tpu.memory_space<vmem>>, %arg5: memref<1x16x1xf32, #tpu.memory_space<vmem>>, %arg6: memref<16x128xf32, #tpu.memory_space<vmem>>, %arg7: memref<16x128xf32, #tpu.memory_space<vmem>>) attributes {dimension_semantics = [#tpu.dimension_semantics<parallel>, #tpu.dimension_semantics<parallel>, #tpu.dimension_semantics<arbitrary>], iteration_bounds = array<i64: 1, 1, 1>, scalar_prefetch = 0 : i64, scratch_operands = 2 : i64, tpu.core_type = #tpu.core_type<tc>, window_params = [{transform_indices = @transform_0, window_bounds = array<i64: 16, 128>}, {transform_indices = @transform_1, window_bounds = array<i64: 1, 16, 1>}, {transform_indices = @transform_2, window_bounds = array<i64: 1, 16, 1>}]} {
    %c0_i32 = arith.constant 0 : i32
    %0 = arith.cmpi eq, %arg2, %c0_i32 : i32
    %1 = arith.extui %0 : i1 to i32
    %c0_i32_0 = arith.constant 0 : i32
    %2 = arith.cmpi ne, %1, %c0_i32_0 : i32
    scf.if %2 {
      %cst = arith.constant 0x7F800000 : f32
      %13 = vector.broadcast %cst : f32 to vector<16x128xf32>
      %c0_12 = arith.constant 0 : index
      %c0_13 = arith.constant 0 : index
      %14 = vector.load %arg6[%c0_12, %c0_13] : memref<16x128xf32, #tpu.memory_space<vmem>>, vector<16x128xf32>
      tpu.vector_store %arg6[%c0_12, %c0_13], %13 {strides = array<i32>} : memref<16x128xf32, #tpu.memory_space<vmem>>, vector<16x128xf32>,
      %cst_14 = arith.constant 0xFF800000 : f32
      %15 = vector.broadcast %cst_14 : f32 to vector<16x128xf32>
      %c0_15 = arith.constant 0 : index
      %c0_16 = arith.constant 0 : index
      %16 = vector.load %arg7[%c0_15, %c0_16] : memref<16x128xf32, #tpu.memory_space<vmem>>, vector<16x128xf32>
      tpu.vector_store %arg7[%c0_15, %c0_16], %15 {strides = array<i32>} : memref<16x128xf32, #tpu.memory_space<vmem>>, vector<16x128xf32>,
    } else {
    }
    %c0 = arith.constant 0 : index
    %c0_1 = arith.constant 0 : index
    %3 = vector.load %arg3[%c0, %c0_1] : memref<16x128xf32, #tpu.memory_space<vmem>>, vector<16x128xf32>
    %c0_2 = arith.constant 0 : index
    %c0_3 = arith.constant 0 : index
    %4 = vector.load %arg6[%c0_2, %c0_3] : memref<16x128xf32, #tpu.memory_space<vmem>>, vector<16x128xf32>
    %5 = arith.minimumf %4, %3 : vector<16x128xf32>
    %c0_4 = arith.constant 0 : index
    %c0_5 = arith.constant 0 : index
    %6 = vector.load %arg6[%c0_4, %c0_5] : memref<16x128xf32, #tpu.memory_space<vmem>>, vector<16x128xf32>
    tpu.vector_store %arg6[%c0_4, %c0_5], %5 {strides = array<i32>} : memref<16x128xf32, #tpu.memory_space<vmem>>, vector<16x128xf32>,
    %c0_6 = arith.constant 0 : index
    %c0_7 = arith.constant 0 : index
    %7 = vector.load %arg7[%c0_6, %c0_7] : memref<16x128xf32, #tpu.memory_space<vmem>>, vector<16x128xf32>
    %8 = arith.maximumf %7, %3 : vector<16x128xf32>
    %c0_8 = arith.constant 0 : index
    %c0_9 = arith.constant 0 : index
    %9 = vector.load %arg7[%c0_8, %c0_9] : memref<16x128xf32, #tpu.memory_space<vmem>>, vector<16x128xf32>
    tpu.vector_store %arg7[%c0_8, %c0_9], %8 {strides = array<i32>} : memref<16x128xf32, #tpu.memory_space<vmem>>, vector<16x128xf32>,
    %c0_i32_10 = arith.constant 0 : i32
    %10 = arith.cmpi eq, %arg2, %c0_i32_10 : i32
    %11 = arith.extui %10 : i1 to i32
    %c0_i32_11 = arith.constant 0 : i32
    %12 = arith.cmpi ne, %11, %c0_i32_11 : i32
    scf.if %12 {
      %c0_12 = arith.constant 0 : index
      %c0_13 = arith.constant 0 : index
      %13 = vector.load %arg6[%c0_12, %c0_13] : memref<16x128xf32, #tpu.memory_space<vmem>>, vector<16x128xf32>
      %cst = arith.constant dense<0x7F800000> : vector<16xf32>
      %14 = vector.multi_reduction <minimumf>, %13, %cst [1] : vector<16x128xf32> to vector<16xf32>
      %15 = vector.shape_cast %14 : vector<16xf32> to vector<16x1xf32>
      %c0_14 = arith.constant 0 : index
      %c0_15 = arith.constant 0 : index
      %c0_16 = arith.constant 0 : index
      %16 = vector.load %arg4[%c0_14, %c0_15, %c0_16] : memref<1x16x1xf32, #tpu.memory_space<vmem>>, vector<1x16x1xf32>
      %17 = vector.shape_cast %16 : vector<1x16x1xf32> to vector<16x1xf32>
      %18 = vector.shape_cast %15 : vector<16x1xf32> to vector<1x16x1xf32>
      tpu.vector_store %arg4[%c0_14, %c0_15, %c0_16], %18 {strides = array<i32>} : memref<1x16x1xf32, #tpu.memory_space<vmem>>, vector<1x16x1xf32>,
      %c0_17 = arith.constant 0 : index
      %c0_18 = arith.constant 0 : index
      %19 = vector.load %arg7[%c0_17, %c0_18] : memref<16x128xf32, #tpu.memory_space<vmem>>, vector<16x128xf32>
      %cst_19 = arith.constant dense<0xFF800000> : vector<16xf32>
      %20 = vector.multi_reduction <maximumf>, %19, %cst_19 [1] : vector<16x128xf32> to vector<16xf32>
      %21 = vector.shape_cast %20 : vector<16xf32> to vector<16x1xf32>
      %c0_20 = arith.constant 0 : index
      %c0_21 = arith.constant 0 : index
      %c0_22 = arith.constant 0 : index
      %22 = vector.load %arg5[%c0_20, %c0_21, %c0_22] : memref<1x16x1xf32, #tpu.memory_space<vmem>>, vector<1x16x1xf32>
      %23 = vector.shape_cast %22 : vector<1x16x1xf32> to vector<16x1xf32>
      %24 = vector.shape_cast %21 : vector<16x1xf32> to vector<1x16x1xf32>
      tpu.vector_store %arg5[%c0_20, %c0_21, %c0_22], %24 {strides = array<i32>} : memref<1x16x1xf32, #tpu.memory_space<vmem>>, vector<1x16x1xf32>,
    } else {
    }
    return
  }
  func.func @transform_0(%arg0: i32, %arg1: i32, %arg2: i32) -> (i32, i32) {
    %c1_i32 = arith.constant 1 : i32
    %0 = arith.muli %arg1, %c1_i32 : i32
    %1 = arith.addi %0, %arg2 : i32
    %c0_i32 = arith.constant 0 : i32
    return %arg0, %1 : i32, i32
  }
  func.func @transform_1(%arg0: i32, %arg1: i32, %arg2: i32) -> (i32, i32, i32) {
    %c0_i32 = arith.constant 0 : i32
    %c0_i32_0 = arith.constant 0 : i32
    return %arg1, %arg0, %c0_i32 : i32, i32, i32
  }
  func.func @transform_2(%arg0: i32, %arg1: i32, %arg2: i32) -> (i32, i32, i32) {
    %c0_i32 = arith.constant 0 : i32
    %c0_i32_0 = arith.constant 0 : i32
    return %arg1, %arg0, %c0_i32 : i32, i32, i32
  }
}

</mosaic_0001>

<bundles_post_ra>
// kernel: tpu_custom_call.1
= control target key start
LH: loop header
LB: loop body
LE: loop exit
PB: predicated region body
PF: predicated region fallthrough
CT: control target
= control target key end

     0   :  { %8 = vsyncpa [#allocation5], 0  ;;  %s110_s12 = smov [#allocation4]   ;;  %s111_s14 = smov 128   ;;  %s143_s0 = inlined_call_operand.hbm [shape: f32[16,128], index: 0, kind: input, shape index: {}]   ;;  %s144_s1 = inlined_call_operand.vmem [shape: f32[1,16,1], index: 1, kind: output, shape index: {0}]   ;;  %s145_s2 = inlined_call_operand.vmem [shape: f32[1,16,1], index: 2, kind: output, shape index: {1}]  }
   0x1   :  { %s16_s11 = sshll.u32 %s143_s0, 4  ;;  %s18_s13 = sshll.u32 %s110_s12, 4  ;;  %s17_s11 = int_to_ptr.hbm [resolvable:$true] %s16_s11  ;;  %s19_s13 = int_to_ptr.vmem [resolvable:$true] %s18_s13 }
   0x2   :  { %s112_s15 = smov 8  }
   0x3   :  { %24 = dma.hbm_to_vmem [thread:$0]  %s17_s11, 256, %s19_s13, [#allocation5], %s111_s14, %s111_s14, %s112_s15  }
   0x4   :  { %108 = dma.done.wait [#allocation5], 256  }
   0x5   :  { %109 = vsyncadd [#allocation5], 4294967040  ;;  %v38_v0 = vld [vmem:[#allocation4] sm:$0xff]  ;;  %v39_v1 = vld [vmem:[#allocation4 + $0x8] sm:$0xff]  ;;  %vm61_vm0 = vcmask 7168  }
   0x6   :  { %66 = vmax.xlane.f32.xlu1 %v38_v0  ;;  %57 = vmin.xlane.f32.xlu0 %v38_v0 }
   0xe   :  { %68 = vmax.xlane.f32.xlu1 %v39_v1  ;;  %59 = vmin.xlane.f32.xlu0 %v39_v1 }
  0x79   :  { %v67_v2 = vpop.xlane.xlu1 %66  ;;  %v58_v3 = vpop.xlane.xlu0 %57 }
  0x7a   :  { %70 = vst.msk [vmem:[%s145_s2] sm:$0xff] %vm61_vm0, %v67_v2 }
  0x7b   :  { %62 = vst.msk [vmem:[%s144_s1] sm:$0xff] %vm61_vm0, %v58_v3 }
  0x81   :  { %v69_v4 = vpop.xlane.xlu1 %68  ;;  %v60_v5 = vpop.xlane.xlu0 %59 }
  0x82   :  { %71 = vst.msk [vmem:[%s145_s2 + $0x8] sm:$0xff] %vm61_vm0, %v69_v4 }
  0x83   :  { %63 = vst.msk [vmem:[%s144_s1 + $0x8] sm:$0xff] %vm61_vm0, %v60_v5 }
  0x84   :  { %80 = vsyncpa [#allocation5], 1 }

</bundles_post_ra>
